<compile_context>
chip_gen: v7x
topology: tpu7x:2x2x1
jax: 0.10.0
libtpu: 0.0.40
codegen_flags: <defaults>
</compile_context>

<pallas_src>
import functools

import jax
import jax.numpy as jnp
from jax.experimental import pallas as pl
from jax.experimental.pallas import tpu as pltpu

_LANES = 128
_SUBLANES = 8


def _silu(v):
    return v * jax.nn.sigmoid(v)


def _round_up(n, m):
    return ((n + m - 1) // m) * m


def simple_point_mlp_kernel(
    x_ref, t_ref,
    te_w1_ref, te_b1_ref,
    w1x_ref, wf_ref, b1_ref,
    w2_ref, b2_ref,
    w3_ref, b3_ref,
    w4_ref, b4_ref,
    out_ref,
):
    f32 = jnp.float32
    bf16 = jnp.bfloat16

    # ---- time embedding, layer 1 (K == 1 -> VPU outer product, not MXU) ----
    t = t_ref[...]                                            # (TB, 1) f32
    h_t = _silu(t * te_w1_ref[...] + te_b1_ref[...])          # (TB, TE) f32

    # ---- net layer 1: x @ W1x + h_t @ (te_w2 @ W1t) + (b1 + te_b2 @ W1t) ----
    # (second time-embed Linear folded into wf_ref / b1_ref in the wrapper)
    h = (jnp.dot(x_ref[...].astype(bf16), w1x_ref[...], preferred_element_type=f32)
         + jnp.dot(h_t.astype(bf16), wf_ref[...], preferred_element_type=f32)
         + b1_ref[...])
    h = _silu(h)

    # ---- net layers 2..3: Linear(H,H) -> SiLU ----
    h = _silu(jnp.dot(h.astype(bf16), w2_ref[...], preferred_element_type=f32)
              + b2_ref[...])
    h = _silu(jnp.dot(h.astype(bf16), w3_ref[...], preferred_element_type=f32)
              + b3_ref[...])

    # ---- final Linear(H, P) -- weight zero-padded to 128 lanes so this store
    # is a full-width lane-dense vst ----
    out = (jnp.dot(h.astype(bf16), w4_ref[...], preferred_element_type=f32)
           + b4_ref[...])
    out_ref[...] = out.astype(out_ref.dtype)


@functools.partial(jax.jit, static_argnames=("block_rows",))
def simple_point_mlp(x, t, params, *, block_rows=2048):
    """x: (B, P) f32, t: (B,) f32. Returns (B, P) f32."""
    B, P = x.shape
    H = params["w2"].shape[0]

    # Batch tile: multiple of 8 sublanes; pad B so every tile is full.
    TB = _round_up(min(block_rows, _round_up(B, _SUBLANES)), _SUBLANES)
    B_pad = _round_up(B, TB)
    OUT = _round_up(P, _LANES)        # lane-dense output slab width

    f32 = jnp.float32
    bf16 = jnp.bfloat16

    x_p = jnp.zeros((B_pad, P), f32).at[:B].set(x.astype(f32))
    t_p = jnp.zeros((B_pad, 1), f32).at[:B, 0].set(t.astype(f32))

    # Fold the second time-embed Linear into the first net-layer t_emb path
    # (f32 fold in the wrapper, bf16 into the kernel's MXU operand).
    wf = (params["te_w2"].astype(f32) @ params["w1t"].astype(f32))      # (TE, H)
    b1f = params["b1"].astype(f32) + params["te_b2"].astype(f32) @ params["w1t"].astype(f32)

    # Final layer padded to 128 output lanes (zeros in the padded columns).
    w4_pad = jnp.zeros((H, OUT), f32).at[:, :P].set(params["w4"]).astype(bf16)
    b4_pad = jnp.zeros((1, OUT), f32).at[:, :P].set(params["b4"])

    # Weights used as MXU operands go in as bf16 (f32 accumulation inside the
    # kernel); te_w1 stays f32 (its layer runs on the VPU); biases stay f32.
    weights = (
        params["te_w1"].astype(f32), params["te_b1"].astype(f32),
        params["w1x"].astype(bf16), wf.astype(bf16), b1f,
        params["w2"].astype(bf16), params["b2"].astype(f32),
        params["w3"].astype(bf16), params["b3"].astype(f32),
        w4_pad, b4_pad,
    )

    def batch_spec(cols):
        return pl.BlockSpec((TB, cols), lambda i: (i, 0))

    def resident_spec(arr):
        # Full-array block, constant block index: DMA'd once, VMEM-resident
        # and reused across every batch tile.
        return pl.BlockSpec(arr.shape, lambda i: (0, 0))

    grid = (B_pad // TB,)
    out = pl.pallas_call(
        simple_point_mlp_kernel,
        out_shape=jax.ShapeDtypeStruct((B_pad, OUT), f32),
        grid=grid,
        in_specs=[batch_spec(P), batch_spec(1)]
                 + [resident_spec(w) for w in weights],
        out_specs=batch_spec(OUT),
        compiler_params=pltpu.CompilerParams(
            dimension_semantics=("parallel",)),
    )(x_p, t_p, *weights)

    return out[:B, :P]


def init_params(key, point_dim, time_embed_dim, hidden_dim):
    """Deterministic synthetic parameters. Weights stored as (in, out), f32."""
    def dense(key, n_in, n_out):
        kw, kb = jax.random.split(key)
        scale = 1.0 / jnp.sqrt(jnp.float32(n_in))
        w = jax.random.uniform(kw, (n_in, n_out), jnp.float32, -scale, scale)
        b = jax.random.uniform(kb, (1, n_out), jnp.float32, -scale, scale)
        return w, b

    ks = jax.random.split(key, 6)
    te_w1, te_b1 = dense(ks[0], 1, time_embed_dim)
    te_w2, te_b2 = dense(ks[1], time_embed_dim, time_embed_dim)
    w1, b1 = dense(ks[2], point_dim + time_embed_dim, hidden_dim)
    w2, b2 = dense(ks[3], hidden_dim, hidden_dim)
    w3, b3 = dense(ks[4], hidden_dim, hidden_dim)
    w4, b4 = dense(ks[5], hidden_dim, point_dim)

    return {
        "te_w1": te_w1, "te_b1": te_b1, "te_w2": te_w2, "te_b2": te_b2,
        # split the first net Linear's weight across [x | t_emb] inputs
        "w1x": w1[:point_dim, :], "w1t": w1[point_dim:, :], "b1": b1,
        "w2": w2, "b2": b2,
        "w3": w3, "b3": b3,
        "w4": w4, "b4": b4,
    }


def reference_forward(x, t, p):
    """Pure-JAX f32 reference matching the PyTorch forward semantics
    (uses the UNFUSED parameters, so it also validates the wrapper fold)."""
    t2d = t.reshape(-1, 1)
    h = jax.nn.silu(t2d @ p["te_w1"] + p["te_b1"])
    t_emb = h @ p["te_w2"] + p["te_b2"]
    x_t = jnp.concatenate([x, t_emb], axis=-1)
    w1 = jnp.concatenate([p["w1x"], p["w1t"]], axis=0)
    h = jax.nn.silu(x_t @ w1 + p["b1"])
    h = jax.nn.silu(h @ p["w2"] + p["b2"])
    h = jax.nn.silu(h @ p["w3"] + p["b3"])
    return h @ p["w4"] + p["b4"]


if __name__ == "__main__":
    point_dim, time_embed_dim, hidden_dim = 4, 32, 64

    key = jax.random.PRNGKey(0)
    kx1, kt1, kx2, kt2, kp = jax.random.split(key, 5)
    params = init_params(kp, point_dim, time_embed_dim, hidden_dim)

    # Case 1: small batch -> single tile, grid=(1,).
    B1 = 8
    x1 = jax.random.normal(kx1, (B1, point_dim), jnp.float32)
    t1 = jax.random.uniform(kt1, (B1,), jnp.float32)
    out1 = jax.block_until_ready(simple_point_mlp(x1, t1, params))
    ref1 = reference_forward(x1, t1, params)
    assert out1.shape == (B1, point_dim)
    assert jnp.allclose(out1, ref1, atol=2e-2, rtol=2e-2), "mismatch vs reference (B=8)"

    # Case 2: ragged batch -> multi-step grid exercising pipelining + tail padding.
    B2 = 50
    x2 = jax.random.normal(kx2, (B2, point_dim), jnp.float32)
    t2 = jax.random.uniform(kt2, (B2,), jnp.float32)
    out2 = jax.block_until_ready(simple_point_mlp(x2, t2, params, block_rows=16))
    ref2 = reference_forward(x2, t2, params)
    assert out2.shape == (B2, point_dim)
    assert jnp.allclose(out2, ref2, atol=2e-2, rtol=2e-2), "mismatch vs reference (B=50)"

    print("KERNEL_OK")
</pallas_src>

<mosaic_0001>
module attributes {stable_mosaic.version = 11 : i64} {
  func.func @simple_point_mlp_kernel(%arg0: i32, %arg1: memref<8x4xf32, #tpu.memory_space<vmem>>, %arg2: memref<8x1xf32, #tpu.memory_space<vmem>>, %arg3: memref<1x32xf32, #tpu.memory_space<vmem>>, %arg4: memref<1x32xf32, #tpu.memory_space<vmem>>, %arg5: memref<4x64xbf16, #tpu.memory_space<vmem>>, %arg6: memref<32x64xbf16, #tpu.memory_space<vmem>>, %arg7: memref<1x64xf32, #tpu.memory_space<vmem>>, %arg8: memref<64x64xbf16, #tpu.memory_space<vmem>>, %arg9: memref<1x64xf32, #tpu.memory_space<vmem>>, %arg10: memref<64x64xbf16, #tpu.memory_space<vmem>>, %arg11: memref<1x64xf32, #tpu.memory_space<vmem>>, %arg12: memref<64x128xbf16, #tpu.memory_space<vmem>>, %arg13: memref<1x128xf32, #tpu.memory_space<vmem>>, %arg14: memref<8x128xf32, #tpu.memory_space<vmem>>) attributes {dimension_semantics = [#tpu.dimension_semantics<parallel>], iteration_bounds = array<i64: 1>, scalar_prefetch = 0 : i64, scratch_operands = 0 : i64, tpu.core_type = #tpu.core_type<tc>, window_params = [{transform_indices = @transform_0, window_bounds = array<i64: 8, 4>}, {transform_indices = @transform_1, window_bounds = array<i64: 8, 1>}, {pipeline_mode = #tpu.pipeline_mode<synchronous>, transform_indices = @transform_2, window_bounds = array<i64: 1, 32>}, {pipeline_mode = #tpu.pipeline_mode<synchronous>, transform_indices = @transform_3, window_bounds = array<i64: 1, 32>}, {pipeline_mode = #tpu.pipeline_mode<synchronous>, transform_indices = @transform_4, window_bounds = array<i64: 4, 64>}, {pipeline_mode = #tpu.pipeline_mode<synchronous>, transform_indices = @transform_5, window_bounds = array<i64: 32, 64>}, {pipeline_mode = #tpu.pipeline_mode<synchronous>, transform_indices = @transform_6, window_bounds = array<i64: 1, 64>}, {pipeline_mode = #tpu.pipeline_mode<synchronous>, transform_indices = @transform_7, window_bounds = array<i64: 64, 64>}, {pipeline_mode = #tpu.pipeline_mode<synchronous>, transform_indices = @transform_8, window_bounds = array<i64: 1, 64>}, {pipeline_mode = #tpu.pipeline_mode<synchronous>, transform_indices = @transform_9, window_bounds = array<i64: 64, 64>}, {pipeline_mode = #tpu.pipeline_mode<synchronous>, transform_indices = @transform_10, window_bounds = array<i64: 1, 64>}, {pipeline_mode = #tpu.pipeline_mode<synchronous>, transform_indices = @transform_11, window_bounds = array<i64: 64, 128>}, {pipeline_mode = #tpu.pipeline_mode<synchronous>, transform_indices = @transform_12, window_bounds = array<i64: 1, 128>}, {transform_indices = @transform_13, window_bounds = array<i64: 8, 128>}]} {
    %c0 = arith.constant 0 : index
    %c0_0 = arith.constant 0 : index
    %0 = vector.load %arg2[%c0, %c0_0] : memref<8x1xf32, #tpu.memory_space<vmem>>, vector<8x1xf32>
    %c0_1 = arith.constant 0 : index
    %c0_2 = arith.constant 0 : index
    %1 = vector.load %arg3[%c0_1, %c0_2] : memref<1x32xf32, #tpu.memory_space<vmem>>, vector<1x32xf32>
    %2 = vector.broadcast %0 : vector<8x1xf32> to vector<8x32xf32>
    %3 = vector.broadcast %1 : vector<1x32xf32> to vector<8x32xf32>
    %4 = arith.mulf %2, %3 : vector<8x32xf32>
    %c0_3 = arith.constant 0 : index
    %c0_4 = arith.constant 0 : index
    %5 = vector.load %arg4[%c0_3, %c0_4] : memref<1x32xf32, #tpu.memory_space<vmem>>, vector<1x32xf32>
    %6 = vector.broadcast %5 : vector<1x32xf32> to vector<8x32xf32>
    %7 = arith.addf %4, %6 : vector<8x32xf32>
    %8 = arith.negf %7 : vector<8x32xf32>
    %9 = math.exp %8 : vector<8x32xf32>
    %cst = arith.constant 1.000000e+00 : f32
    %10 = vector.broadcast %cst : f32 to vector<8x32xf32>
    %11 = arith.addf %10, %9 : vector<8x32xf32>
    %12 = arith.divf %10, %11 : vector<8x32xf32>
    %13 = arith.mulf %7, %12 : vector<8x32xf32>
    %c0_5 = arith.constant 0 : index
    %c0_6 = arith.constant 0 : index
    %14 = vector.load %arg1[%c0_5, %c0_6] : memref<8x4xf32, #tpu.memory_space<vmem>>, vector<8x4xf32>
    %15 = arith.truncf %14 : vector<8x4xf32> to vector<8x4xbf16>
    %c0_7 = arith.constant 0 : index
    %c0_8 = arith.constant 0 : index
    %16 = vector.load %arg5[%c0_7, %c0_8] : memref<4x64xbf16, #tpu.memory_space<vmem>>, vector<4x64xbf16>
    %cst_9 = arith.constant dense<0.000000e+00> : vector<8x64xf32>
    %17 = tpu.matmul %15, %16, %cst_9 {dimension_numbers = #tpu.dot_dimension_numbers<[1], [0], [0], [1], [0, 0, 1, 1], [], []>} : vector<8x4xbf16>, vector<4x64xbf16>, vector<8x64xf32> -> vector<8x64xf32>
    %18 = arith.truncf %13 : vector<8x32xf32> to vector<8x32xbf16>
    %c0_10 = arith.constant 0 : index
    %c0_11 = arith.constant 0 : index
    %19 = vector.load %arg6[%c0_10, %c0_11] : memref<32x64xbf16, #tpu.memory_space<vmem>>, vector<32x64xbf16>
    %cst_12 = arith.constant dense<0.000000e+00> : vector<8x64xf32>
    %20 = tpu.matmul %18, %19, %cst_12 {dimension_numbers = #tpu.dot_dimension_numbers<[1], [0], [0], [1], [0, 0, 1, 1], [], []>} : vector<8x32xbf16>, vector<32x64xbf16>, vector<8x64xf32> -> vector<8x64xf32>
    %21 = arith.addf %17, %20 : vector<8x64xf32>
    %c0_13 = arith.constant 0 : index
    %c0_14 = arith.constant 0 : index
    %22 = vector.load %arg7[%c0_13, %c0_14] : memref<1x64xf32, #tpu.memory_space<vmem>>, vector<1x64xf32>
    %23 = vector.broadcast %22 : vector<1x64xf32> to vector<8x64xf32>
    %24 = arith.addf %21, %23 : vector<8x64xf32>
    %25 = arith.negf %24 : vector<8x64xf32>
    %26 = math.exp %25 : vector<8x64xf32>
    %cst_15 = arith.constant 1.000000e+00 : f32
    %27 = vector.broadcast %cst_15 : f32 to vector<8x64xf32>
    %28 = arith.addf %27, %26 : vector<8x64xf32>
    %29 = arith.divf %27, %28 : vector<8x64xf32>
    %30 = arith.mulf %24, %29 : vector<8x64xf32>
    %31 = arith.truncf %30 : vector<8x64xf32> to vector<8x64xbf16>
    %c0_16 = arith.constant 0 : index
    %c0_17 = arith.constant 0 : index
    %32 = vector.load %arg8[%c0_16, %c0_17] : memref<64x64xbf16, #tpu.memory_space<vmem>>, vector<64x64xbf16>
    %cst_18 = arith.constant dense<0.000000e+00> : vector<8x64xf32>
    %33 = tpu.matmul %31, %32, %cst_18 {dimension_numbers = #tpu.dot_dimension_numbers<[1], [0], [0], [1], [0, 0, 1, 1], [], []>} : vector<8x64xbf16>, vector<64x64xbf16>, vector<8x64xf32> -> vector<8x64xf32>
    %c0_19 = arith.constant 0 : index
    %c0_20 = arith.constant 0 : index
    %34 = vector.load %arg9[%c0_19, %c0_20] : memref<1x64xf32, #tpu.memory_space<vmem>>, vector<1x64xf32>
    %35 = vector.broadcast %34 : vector<1x64xf32> to vector<8x64xf32>
    %36 = arith.addf %33, %35 : vector<8x64xf32>
    %37 = arith.negf %36 : vector<8x64xf32>
    %38 = math.exp %37 : vector<8x64xf32>
    %cst_21 = arith.constant 1.000000e+00 : f32
    %39 = vector.broadcast %cst_21 : f32 to vector<8x64xf32>
    %40 = arith.addf %39, %38 : vector<8x64xf32>
    %41 = arith.divf %39, %40 : vector<8x64xf32>
    %42 = arith.mulf %36, %41 : vector<8x64xf32>
    %43 = arith.truncf %42 : vector<8x64xf32> to vector<8x64xbf16>
    %c0_22 = arith.constant 0 : index
    %c0_23 = arith.constant 0 : index
    %44 = vector.load %arg10[%c0_22, %c0_23] : memref<64x64xbf16, #tpu.memory_space<vmem>>, vector<64x64xbf16>
    %cst_24 = arith.constant dense<0.000000e+00> : vector<8x64xf32>
    %45 = tpu.matmul %43, %44, %cst_24 {dimension_numbers = #tpu.dot_dimension_numbers<[1], [0], [0], [1], [0, 0, 1, 1], [], []>} : vector<8x64xbf16>, vector<64x64xbf16>, vector<8x64xf32> -> vector<8x64xf32>
    %c0_25 = arith.constant 0 : index
    %c0_26 = arith.constant 0 : index
    %46 = vector.load %arg11[%c0_25, %c0_26] : memref<1x64xf32, #tpu.memory_space<vmem>>, vector<1x64xf32>
    %47 = vector.broadcast %46 : vector<1x64xf32> to vector<8x64xf32>
    %48 = arith.addf %45, %47 : vector<8x64xf32>
    %49 = arith.negf %48 : vector<8x64xf32>
    %50 = math.exp %49 : vector<8x64xf32>
    %cst_27 = arith.constant 1.000000e+00 : f32
    %51 = vector.broadcast %cst_27 : f32 to vector<8x64xf32>
    %52 = arith.addf %51, %50 : vector<8x64xf32>
    %53 = arith.divf %51, %52 : vector<8x64xf32>
    %54 = arith.mulf %48, %53 : vector<8x64xf32>
    %55 = arith.truncf %54 : vector<8x64xf32> to vector<8x64xbf16>
    %c0_28 = arith.constant 0 : index
    %c0_29 = arith.constant 0 : index
    %56 = vector.load %arg12[%c0_28, %c0_29] : memref<64x128xbf16, #tpu.memory_space<vmem>>, vector<64x128xbf16>
    %cst_30 = arith.constant dense<0.000000e+00> : vector<8x128xf32>
    %57 = tpu.matmul %55, %56, %cst_30 {dimension_numbers = #tpu.dot_dimension_numbers<[1], [0], [0], [1], [0, 0, 1, 1], [], []>} : vector<8x64xbf16>, vector<64x128xbf16>, vector<8x128xf32> -> vector<8x128xf32>
    %c0_31 = arith.constant 0 : index
    %c0_32 = arith.constant 0 : index
    %58 = vector.load %arg13[%c0_31, %c0_32] : memref<1x128xf32, #tpu.memory_space<vmem>>, vector<1x128xf32>
    %59 = vector.broadcast %58 : vector<1x128xf32> to vector<8x128xf32>
    %60 = arith.addf %57, %59 : vector<8x128xf32>
    %c0_33 = arith.constant 0 : index
    %c0_34 = arith.constant 0 : index
    %61 = vector.load %arg14[%c0_33, %c0_34] : memref<8x128xf32, #tpu.memory_space<vmem>>, vector<8x128xf32>
    tpu.vector_store %arg14[%c0_33, %c0_34], %60 {strides = array<i32>} : memref<8x128xf32, #tpu.memory_space<vmem>>, vector<8x128xf32>,
    return
  }
  func.func @transform_0(%arg0: i32) -> (i32, i32) {
    %c0_i32 = arith.constant 0 : i32
    %c0_i32_0 = arith.constant 0 : i32
    return %arg0, %c0_i32 : i32, i32
  }
  func.func @transform_1(%arg0: i32) -> (i32, i32) {
    %c0_i32 = arith.constant 0 : i32
    %c0_i32_0 = arith.constant 0 : i32
    return %arg0, %c0_i32 : i32, i32
  }
  func.func @transform_2(%arg0: i32) -> (i32, i32) {
    %c0_i32 = arith.constant 0 : i32
    %c0_i32_0 = arith.constant 0 : i32
    %c0_i32_1 = arith.constant 0 : i32
    return %c0_i32, %c0_i32_0 : i32, i32
  }
  func.func @transform_3(%arg0: i32) -> (i32, i32) {
    %c0_i32 = arith.constant 0 : i32
    %c0_i32_0 = arith.constant 0 : i32
    %c0_i32_1 = arith.constant 0 : i32
    return %c0_i32, %c0_i32_0 : i32, i32
  }
  func.func @transform_4(%arg0: i32) -> (i32, i32) {
    %c0_i32 = arith.constant 0 : i32
    %c0_i32_0 = arith.constant 0 : i32
    %c0_i32_1 = arith.constant 0 : i32
    return %c0_i32, %c0_i32_0 : i32, i32
  }
  func.func @transform_5(%arg0: i32) -> (i32, i32) {
    %c0_i32 = arith.constant 0 : i32
    %c0_i32_0 = arith.constant 0 : i32
    %c0_i32_1 = arith.constant 0 : i32
    return %c0_i32, %c0_i32_0 : i32, i32
  }
  func.func @transform_6(%arg0: i32) -> (i32, i32) {
    %c0_i32 = arith.constant 0 : i32
    %c0_i32_0 = arith.constant 0 : i32
    %c0_i32_1 = arith.constant 0 : i32
    return %c0_i32, %c0_i32_0 : i32, i32
  }
  func.func @transform_7(%arg0: i32) -> (i32, i32) {
    %c0_i32 = arith.constant 0 : i32
    %c0_i32_0 = arith.constant 0 : i32
    %c0_i32_1 = arith.constant 0 : i32
    return %c0_i32, %c0_i32_0 : i32, i32
  }
  func.func @transform_8(%arg0: i32) -> (i32, i32) {
    %c0_i32 = arith.constant 0 : i32
    %c0_i32_0 = arith.constant 0 : i32
    %c0_i32_1 = arith.constant 0 : i32
    return %c0_i32, %c0_i32_0 : i32, i32
  }
  func.func @transform_9(%arg0: i32) -> (i32, i32) {
    %c0_i32 = arith.constant 0 : i32
    %c0_i32_0 = arith.constant 0 : i32
    %c0_i32_1 = arith.constant 0 : i32
    return %c0_i32, %c0_i32_0 : i32, i32
  }
  func.func @transform_10(%arg0: i32) -> (i32, i32) {
    %c0_i32 = arith.constant 0 : i32
    %c0_i32_0 = arith.constant 0 : i32
    %c0_i32_1 = arith.constant 0 : i32
    return %c0_i32, %c0_i32_0 : i32, i32
  }
  func.func @transform_11(%arg0: i32) -> (i32, i32) {
    %c0_i32 = arith.constant 0 : i32
    %c0_i32_0 = arith.constant 0 : i32
    %c0_i32_1 = arith.constant 0 : i32
    return %c0_i32, %c0_i32_0 : i32, i32
  }
  func.func @transform_12(%arg0: i32) -> (i32, i32) {
    %c0_i32 = arith.constant 0 : i32
    %c0_i32_0 = arith.constant 0 : i32
    %c0_i32_1 = arith.constant 0 : i32
    return %c0_i32, %c0_i32_0 : i32, i32
  }
  func.func @transform_13(%arg0: i32) -> (i32, i32) {
    %c0_i32 = arith.constant 0 : i32
    %c0_i32_0 = arith.constant 0 : i32
    return %arg0, %c0_i32 : i32, i32
  }
}

</mosaic_0001>

<bundles_post_ra>
// kernel: simple_point_mlp.1
= control target key start
LH: loop header
LB: loop body
LE: loop exit
PB: predicated region body
PF: predicated region fallthrough
CT: control target
= control target key end

     0   :  { %v603_v0 = vmov 0   ;;  %v604_v3 = vmov 0.0   ;;  %vm605_vm0 = vmmov 0   ;;  %vm142_vm1 = vcmask 1041408   ;;  %s776_s1 = inlined_call_operand.vmem [shape: f32[8,1], index: 1, kind: input, shape index: {}]   ;;  %s777_s5 = inlined_call_operand.vmem [shape: bf16[32,64], index: 5, kind: input, shape index: {}]   ;;  %s778_s2 = inlined_call_operand.vmem [shape: f32[1,32], index: 2, kind: input, shape index: {}]   ;;  %s779_s3 = inlined_call_operand.vmem [shape: f32[1,32], index: 3, kind: input, shape index: {}]   ;;  %s780_s4 = inlined_call_operand.vmem [shape: bf16[4,64], index: 4, kind: input, shape index: {}]   ;;  %s781_s0 = inlined_call_operand.vmem [shape: f32[8,4], index: 0, kind: input, shape index: {}]   ;;  %s782_s7 = inlined_call_operand.vmem [shape: bf16[64,64], index: 7, kind: input, shape index: {}]   ;;  %s783_s6 = inlined_call_operand.vmem [shape: f32[1,64], index: 6, kind: input, shape index: {}]   ;;  %s784_s9 = inlined_call_operand.vmem [shape: bf16[64,64], index: 9, kind: input, shape index: {}]   ;;  %s785_s8 = inlined_call_operand.vmem [shape: f32[1,64], index: 8, kind: input, shape index: {}]   ;;  %s786_s11 = inlined_call_operand.vmem [shape: bf16[64,128], index: 11, kind: input, shape index: {}]   ;;  %s787_s10 = inlined_call_operand.vmem [shape: f32[1,64], index: 10, kind: input, shape index: {}]   ;;  %s788_s12 = inlined_call_operand.vmem [shape: f32[1,128], index: 12, kind: input, shape index: {}]   ;;  %s789_s13 = inlined_call_operand.vmem [shape: f32[8,128], index: 13, kind: output, shape index: {}]  }
   0x1   :  { %572 = vset.pattern.permute.xlu0 %v603_v0  ;;  %v45_v1 = vld [vmem:[%s776_s1] sm:$0xff]  ;;  %519 = vmatprep.subr.bf16.mxu0 %v604_v3  ;;  %v574_v4 = vld [vmem:[%s777_s5 + $0x8] sm:$0xff]   ;;  %vm94_vm2 = vcmask 261120   ;;  %vm138_vm3 = vcmask 31744   ;;  %v577_v22 = vld [vmem:[%s782_s7 + $0x10] sm:$0xff]   ;;  %vm241_vm4 = vcmask 523264  }
   0x2   :  { %49 = vperm.xlu0 %572, %v45_v1   ;;  %v573_v2 = vld [vmem:[%s777_s5] sm:$0xff]   ;;  %533 = vmatprep.subr.bf16.mxu1 %v604_v3  ;;  %v576_v21 = vld [vmem:[%s782_s7 + $0x8] sm:$0xff]   ;;  %v578_v23 = vld [vmem:[%s782_s7 + $0x18] sm:$0xff]  }
   0x3   :  { %520 = vmatpush3.bf16.msra.mxu0 %v573_v2  ;;  %523 = vmatprep.mubr.msk.bf16.mxu0 %vm605_vm0, %v604_v3  ;;  %v470_v5 = vld [vmem:[%s778_s2] ss:$0 sm:$0xff]  ;;  %v580_v42 = vld [vmem:[%s784_s9 + $0x8] sm:$0xff]   ;;  %v581_v43 = vld [vmem:[%s784_s9 + $0x10] sm:$0xff]  }
   0x4   :  { %521 = vmatprep.subr.bf16.mxu0 %v604_v3  ;;  %541 = vmatprep.mubr.msk.bf16.mxu1 %vm605_vm0, %v604_v3  ;;  %v471_v6 = vld [vmem:[%s779_s3] ss:$0 sm:$0xff]  ;;  %v582_v44 = vld [vmem:[%s784_s9 + $0x18] sm:$0xff]   ;;  %v584_v58 = vld [vmem:[%s786_s11 + $0x8] sm:$0xff]  }
   0x5   :  { %v76_v14 = vld [vmem:[%s780_s4] sm:$0x3]  ;;  %v585_v59 = vld [vmem:[%s786_s11 + $0x10] sm:$0xff]   ;;  %v586_v60 = vld [vmem:[%s786_s11 + $0x18] sm:$0xff]  }
   0x6   :  { %v144_v17 = vsel %vm142_vm1, %v76_v14, 0  ;;  %v74_v18 = vld [vmem:[%s781_s0] sm:$0xff] }
   0x7   :  { %522 = vmatpush3.bf16.msra.mxu0 %v574_v4  ;;  %v75_v19 = vpack.c.bf16 %v74_v18, %v74_v18  ;;  %v575_v20 = vld [vmem:[%s782_s7] sm:$0xff]  }
   0x8   :  { %527 = vmatprep.subr.bf16.mxu0 %v604_v3  ;;  %534 = vmatpush3.bf16.msra.mxu1 %v575_v20  ;;  %v477_v29 = vld [vmem:[%s783_s6] ss:$0 sm:$0xff] }
   0x9   :  { %535 = vmatprep.subr.bf16.mxu1 %v604_v3  ;;  %v579_v41 = vld [vmem:[%s784_s9] sm:$0xff]  }
   0xa   :  { %v479_v45 = vld [vmem:[%s785_s8] ss:$0 sm:$0xff] }
   0xb   :  { %v583_v57 = vld [vmem:[%s786_s11] sm:$0xff]  }
   0xc   :  { %536 = vmatpush3.bf16.msra.mxu1 %v576_v21  ;;  %v486_v61 = vld [vmem:[%s787_s10] ss:$0 sm:$0xff] }
   0xd   :  { %537 = vmatprep.subr.bf16.mxu1 %v604_v3 }
  0x10   :  { %538 = vmatpush3.bf16.msra.mxu1 %v577_v22 }
  0x11   :  { %539 = vmatprep.subr.bf16.mxu1 %v604_v3 }
  0x14   :  { %540 = vmatpush3.bf16.msra.mxu1 %v578_v23 }
  0x15   :  { %557 = vmatprep.subr.bf16.mxu1 %v604_v3 }
  0x81   :  { %v50_v7 = vpop.permute.xlu0 %49 }
  0x82   :  { %v58_v8 = vmul.f32 %v470_v5, %v50_v7 }
  0x84   :  { %v66_v9 = vadd.f32 %v471_v6, %v58_v8 }
  0x86   :  { %v472_v10 = vmul.f32 -1.442695, %v66_v9 }
  0x88   :  { %587 = vpow2.f32 %v472_v10 }
  0x92   :  { %v588_v11 = vpop.eup %587 }
  0x93   :  { %v70_v12 = vadd.f32 1.0, %v588_v11 }
  0x95   :  { %589 = vrcp.f32 %v70_v12 }
  0x9f   :  { %v590_v13 = vpop.eup %589 }
  0xa0   :  { %v73_v15 = vmul.f32 %v590_v13, %v66_v9  ;;  %v493_v9 = vld [vmem:[%s788_s12] ss:$0 sm:$0xff] }
  0xa2   :  { %v77_v16 = vpack.c.bf16 %v73_v15, %v73_v15 }
  0xa4   :  { %524 = vmatmul.mubr.msk.bf16.vlgmr.msra.gmra.mrb[0].mxu0 %vm94_vm2, %v77_v16 }
  0xa5   :  { %528 = vmatpush3.bf16.msra.mxu0 %v144_v17  ;;  %529 = vmatprep.mubr.msk.bf16.mxu0 %vm605_vm0, %v604_v3 }
  0xa6   :  { %545 = vmatprep.subr.bf16.mxu0 %v604_v3 }
  0xac   :  { %530 = vmatmul.mubr.msk.bf16.vlgmr.msra.gmra.mrb[4].mxu0 %vm138_vm3, %v75_v19 }
  0xad   :  { %553 = vmatprep.mubr.msk.bf16.mxu0 %vm605_vm0, %v604_v3  ;;  %546 = vmatpush3.bf16.msra.mxu0 %v579_v41 }
  0xae   :  { %547 = vmatprep.subr.bf16.mxu0 %v604_v3 }
  0xb1   :  { %548 = vmatpush3.bf16.msra.mxu0 %v580_v42 }
  0xb2   :  { %549 = vmatprep.subr.bf16.mxu0 %v604_v3 }
  0xb5   :  { %550 = vmatpush3.bf16.msra.mxu0 %v581_v43 }
  0xb6   :  { %551 = vmatprep.subr.bf16.mxu0 %v604_v3 }
  0xb9   :  { %552 = vmatpush3.bf16.msra.mxu0 %v582_v44 }
 0x177   :  { %v132_v24 = vpop.f32.mrb[0].mxu0 }
 0x178   :  { %v525_v25 = vpop.f32.mrb[1].mxu0 }
 0x179   :  { %v135_v26 = vpop.f32.mrb[2].mxu0 }
 0x17a   :  { %v526_v27 = vpop.f32.mrb[3].mxu0 }
 0x17f   :  { %v180_v28 = vpop.f32.mrb[4].mxu0 }
 0x180   :  { %v181_v30 = vadd.f32 %v180_v28, %v132_v24  ;;  %v531_v31 = vpop.f32.mrb[5].mxu0 }
 0x181   :  { %v183_v32 = vpop.f32.mrb[6].mxu0 }
 0x182   :  { %v193_v33 = vadd.f32 %v477_v29, %v181_v30  ;;  %v532_v34 = vpop.f32.mrb[7].mxu0 }
 0x184   :  { %v478_v35 = vmul.f32 -1.442695, %v193_v33 }
 0x186   :  { %591 = vpow2.f32 %v478_v35 }
 0x190   :  { %v592_v36 = vpop.eup %591 }
 0x191   :  { %v197_v37 = vadd.f32 1.0, %v592_v36 }
 0x193   :  { %593 = vrcp.f32 %v197_v37 }
 0x19d   :  { %v594_v38 = vpop.eup %593 }
 0x19e   :  { %v200_v39 = vmul.f32 %v594_v38, %v193_v33 }
 0x1a0   :  { %v201_v40 = vpack.c.bf16 %v200_v39, %v200_v39 }
 0x1a2   :  { %542 = vmatmul.mubr.msk.bf16.vlgmr.msra.gmra.mrb[0].mxu1 %vm241_vm4, %v201_v40 }
 0x1a3   :  { %565 = vmatprep.mubr.msk.bf16.mxu1 %vm605_vm0, %v604_v3  ;;  %558 = vmatpush3.bf16.msra.mxu1 %v583_v57 }
 0x1a4   :  { %559 = vmatprep.subr.bf16.mxu1 %v604_v3 }
 0x1a7   :  { %560 = vmatpush3.bf16.msra.mxu1 %v584_v58 }
 0x1a8   :  { %561 = vmatprep.subr.bf16.mxu1 %v604_v3 }
 0x1ab   :  { %562 = vmatpush3.bf16.msra.mxu1 %v585_v59 }
 0x1ac   :  { %563 = vmatprep.subr.bf16.mxu1 %v604_v3 }
 0x1af   :  { %564 = vmatpush3.bf16.msra.mxu1 %v586_v60 }
 0x275   :  { %v279_v46 = vpop.f32.mrb[0].mxu1 }
 0x276   :  { %v280_v47 = vadd.f32 %v479_v45, %v279_v46  ;;  %v543_v48 = vpop.f32.mrb[1].mxu1 }
 0x277   :  { %v282_v49 = vpop.f32.mrb[2].mxu1 }
 0x278   :  { %v485_v50 = vmul.f32 -1.442695, %v280_v47  ;;  %v544_v51 = vpop.f32.mrb[3].mxu1 }
 0x27a   :  { %595 = vpow2.f32 %v485_v50 }
 0x284   :  { %v596_v52 = vpop.eup %595 }
 0x285   :  { %v288_v53 = vadd.f32 1.0, %v596_v52 }
 0x287   :  { %597 = vrcp.f32 %v288_v53 }
 0x291   :  { %v598_v54 = vpop.eup %597 }
 0x292   :  { %v291_v55 = vmul.f32 %v598_v54, %v280_v47 }
 0x294   :  { %v292_v56 = vpack.c.bf16 %v291_v55, %v291_v55 }
 0x296   :  { %554 = vmatmul.mubr.msk.bf16.vlgmr.msra.gmra.mrb[8].mxu0 %vm241_vm4, %v292_v56 }
 0x369   :  { %v369_v62 = vpop.f32.mrb[8].mxu0 }
 0x36a   :  { %v370_v63 = vadd.f32 %v486_v61, %v369_v62  ;;  %v555_v0 = vpop.f32.mrb[9].mxu0 }
 0x36b   :  { %v372_v1 = vpop.f32.mrb[10].mxu0 }
 0x36c   :  { %v492_v2 = vmul.f32 -1.442695, %v370_v63  ;;  %v556_v4 = vpop.f32.mrb[11].mxu0 }
 0x36e   :  { %599 = vpow2.f32 %v492_v2 }
 0x378   :  { %v600_v5 = vpop.eup %599 }
 0x379   :  { %v378_v6 = vadd.f32 1.0, %v600_v5 }
 0x37b   :  { %601 = vrcp.f32 %v378_v6 }
 0x385   :  { %v602_v3 = vpop.eup %601 }
 0x386   :  { %v381_v7 = vmul.f32 %v602_v3, %v370_v63 }
 0x388   :  { %v382_v8 = vpack.c.bf16 %v381_v7, %v381_v7 }
 0x38a   :  { %566 = vmatmul.mubr.msk.bf16.vlgmr.msra.gmra.mrb[4].mxu1 %vm241_vm4, %v382_v8 }
 0x45d   :  { %v459_v10 = vpop.f32.mrb[4].mxu1 }
 0x45e   :  { %v460_v11 = vadd.f32 %v493_v9, %v459_v10  ;;  %v567_v12 = vpop.f32.mrb[5].mxu1 }
 0x45f   :  { %v462_v13 = vpop.f32.mrb[6].mxu1 }
 0x460   :  { %465 = vst [vmem:[%s789_s13] sm:$0xff] %v460_v11  ;;  %v568_v14 = vpop.f32.mrb[7].mxu1 }

</bundles_post_ra>
